<compile_context>
chip_gen: v7x
topology: tpu7x:2x2x1
jax: 0.10.0
libtpu: 0.0.40
codegen_flags: <defaults>
</compile_context>

<pallas_src>
import functools

import jax
import jax.numpy as jnp
from jax import lax
from jax.experimental import pallas as pl
from jax.experimental.pallas import tpu as pltpu

MARGIN = 0.5
EPS = 1e-8                                # PyTorch CosineSimilarity default eps
_BLOCK_TARGET_BYTES = 4 * 1024 * 1024     # per-input, per-block DMA target (~4 MiB)
_CHUNK_LANES = 512                        # lane-chunk width for the fused reductions
_SUBLANE_MIN = {4: 8, 2: 16, 1: 32}       # minimum sublane multiple per itemsize


def _fused_row_reductions(a_ref, p_ref, n_ref, rows, dim, chunk):
    """Row-wise (sq_a, sq_p, sq_n, dot_ap, dot_an), each (rows, 1) f32.

    Walks the feature (lane) axis in `chunk`-wide slices so no (rows, dim)
    product temporary is materialized; the five running partial sums are carried
    through a fully-unrolled fori_loop.  Inputs are upcast to f32 per chunk, so
    bf16 embeddings stream at half the HBM bytes.
    """
    def partials(lo, size):
        a = a_ref[:, pl.ds(lo, size)].astype(jnp.float32)
        p = p_ref[:, pl.ds(lo, size)].astype(jnp.float32)
        n = n_ref[:, pl.ds(lo, size)].astype(jnp.float32)
        return (jnp.sum(a * a, axis=-1, keepdims=True),
                jnp.sum(p * p, axis=-1, keepdims=True),
                jnp.sum(n * n, axis=-1, keepdims=True),
                jnp.sum(a * p, axis=-1, keepdims=True),
                jnp.sum(a * n, axis=-1, keepdims=True))

    n_full = dim // chunk
    rem = dim - n_full * chunk

    if n_full == 1:
        acc = partials(0, chunk)                       # static start, single chunk
    elif n_full > 1:
        def body(c, carry):
            lo = pl.multiple_of(c * chunk, chunk)      # lane-aligned dynamic start
            return tuple(x + y for x, y in zip(carry, partials(lo, chunk)))
        init = tuple(jnp.zeros((rows, 1), jnp.float32) for _ in range(5))
        acc = lax.fori_loop(0, n_full, body, init, unroll=True)
    else:
        acc = tuple(jnp.zeros((rows, 1), jnp.float32) for _ in range(5))

    if rem:
        acc = tuple(x + y for x, y in zip(acc, partials(n_full * chunk, rem)))
    return acc


def _triplet_loss_kernel(a_ref, p_ref, n_ref, out_ref, acc_ref, *,
                         batch, block_rows, num_blocks, dim, chunk, margin):
    i = pl.program_id(0)

    @pl.when(i == 0)
    def _init():
        acc_ref[...] = jnp.zeros_like(acc_ref)

    sq_a, sq_p, sq_n, dot_ap, dot_an = _fused_row_reductions(
        a_ref, p_ref, n_ref, block_rows, dim, chunk)

    # PyTorch cosine_similarity eps semantics: clamp the product of squared norms.
    eps_sq = jnp.float32(EPS * EPS)
    cos_pos = dot_ap * lax.rsqrt(jnp.maximum(sq_a * sq_p, eps_sq))
    cos_neg = dot_an * lax.rsqrt(jnp.maximum(sq_a * sq_n, eps_sq))

    losses = jnp.maximum(jnp.float32(margin) - cos_pos + cos_neg, 0.0)  # (TB, 1)

    if batch % block_rows == 0:
        acc_ref[...] += losses
    else:
        last = num_blocks - 1

        @pl.when(i != last)
        def _acc_full():
            acc_ref[...] += losses

        @pl.when(i == last)
        def _acc_masked():
            # Only the ragged last block pays for the mask.
            row = last * block_rows + lax.broadcasted_iota(jnp.int32, losses.shape, 0)
            acc_ref[...] += jnp.where(row < batch, losses, 0.0)

    @pl.when(i == num_blocks - 1)
    def _finalize():
        out_ref[0] = jnp.sum(acc_ref[...]) * jnp.float32(1.0 / batch)


def _pick_block_rows(batch, dim, itemsize, requested=None):
    sub = _SUBLANE_MIN.get(int(itemsize), 8)
    if requested is None:
        # ~4 MiB per input block -> 3 inputs x 2 pipeline buffers ~= 24 MiB resident.
        requested = max(sub, _BLOCK_TARGET_BYTES // max(1, dim * itemsize))
    tb = min(int(requested), batch)
    if tb >= batch:
        return batch                     # single block == full extent (always legal)
    return max(sub, (tb // sub) * sub)   # tiled case: keep dtype sublane multiple


def triplet_loss(anchor, positive, negative, margin=MARGIN, block_rows=None):
    """mean(relu(margin - cos(anchor, positive) + cos(anchor, negative))).

    Note: the reference module's `size_average` flag has no effect (forward always
    returns the mean), so it is not exposed here.
    """
    assert anchor.shape == positive.shape == negative.shape
    D = anchor.shape[-1]
    a = anchor.reshape(-1, D)
    p = positive.reshape(-1, D)
    n = negative.reshape(-1, D)
    B = a.shape[0]

    itemsize = jnp.dtype(a.dtype).itemsize
    tb = _pick_block_rows(B, D, itemsize, block_rows)
    nb = pl.cdiv(B, tb)
    chunk = D if D <= _CHUNK_LANES else _CHUNK_LANES

    kernel = functools.partial(
        _triplet_loss_kernel,
        batch=B, block_rows=tb, num_blocks=nb, dim=D, chunk=chunk,
        margin=float(margin))

    row_spec = lambda i: (i, 0)
    out = pl.pallas_call(
        kernel,
        out_shape=jax.ShapeDtypeStruct((1,), jnp.float32),
        grid_spec=pltpu.PrefetchScalarGridSpec(
            num_scalar_prefetch=0,
            grid=(nb,),
            in_specs=[
                pl.BlockSpec((tb, D), row_spec),
                pl.BlockSpec((tb, D), row_spec),
                pl.BlockSpec((tb, D), row_spec),
            ],
            out_specs=pl.BlockSpec(memory_space=pltpu.MemorySpace.SMEM),
            scratch_shapes=[pltpu.VMEM((tb, 1), jnp.float32)],
        ),
        compiler_params=pltpu.CompilerParams(
            # Running (TB,1) accumulator is carried across the batch axis -> sequential.
            # TODO(synk): v7x-only 2-TC variant: emit per-block partial sums with a
            # "parallel" batch axis and reduce + divide by B in the wrapper.
            dimension_semantics=("arbitrary",),
            vmem_limit_bytes=48 * 1024 * 1024,
        ),
    )(a, p, n)
    return out[0]


if __name__ == "__main__":
    def ref(a, p, n, margin=MARGIN):
        a = a.astype(jnp.float32)
        p = p.astype(jnp.float32)
        n = n.astype(jnp.float32)

        def cos(x, y):
            w12 = jnp.sum(x * y, axis=-1)
            w1 = jnp.sum(x * x, axis=-1)
            w2 = jnp.sum(y * y, axis=-1)
            return w12 / jnp.sqrt(jnp.maximum(w1 * w2, EPS * EPS))

        return jnp.mean(jnp.maximum(margin - cos(a, p) + cos(a, n), 0.0))

    # Test 1: small (batch, feature) shape consistent with the module's usage.
    ka, kp, kn = jax.random.split(jax.random.PRNGKey(0), 3)
    B, D = 8, 128
    anchor = jax.random.normal(ka, (B, D), dtype=jnp.float32)
    positive = jax.random.normal(kp, (B, D), dtype=jnp.float32)
    negative = jax.random.normal(kn, (B, D), dtype=jnp.float32)
    loss = triplet_loss(anchor, positive, negative)
    jax.block_until_ready(loss)
    expected = ref(anchor, positive, negative)
    assert jnp.allclose(loss, expected, atol=1e-5, rtol=1e-5), (loss, expected)

    # Test 2: multi-block grid + ragged last block + lane-chunked fori_loop + remainder.
    k2a, k2p, k2n = jax.random.split(jax.random.PRNGKey(1), 3)
    B2, D2 = 200, 1152                       # 1152 = 2*512 + 128 remainder
    a2 = jax.random.normal(k2a, (B2, D2), dtype=jnp.float32)
    p2 = jax.random.normal(k2p, (B2, D2), dtype=jnp.float32)
    n2 = jax.random.normal(k2n, (B2, D2), dtype=jnp.float32)
    loss2 = triplet_loss(a2, p2, n2, block_rows=64)   # grid=(4,), last block ragged
    jax.block_until_ready(loss2)
    expected2 = ref(a2, p2, n2)
    assert jnp.allclose(loss2, expected2, atol=1e-5, rtol=1e-5), (loss2, expected2)

    # Test 3: bf16 inputs streamed directly (per-chunk upcast to f32 inside the kernel).
    k3a, k3p, k3n = jax.random.split(jax.random.PRNGKey(2), 3)
    B3, D3 = 64, 256
    a3 = jax.random.normal(k3a, (B3, D3), dtype=jnp.bfloat16)
    p3 = jax.random.normal(k3p, (B3, D3), dtype=jnp.bfloat16)
    n3 = jax.random.normal(k3n, (B3, D3), dtype=jnp.bfloat16)
    loss3 = triplet_loss(a3, p3, n3)
    jax.block_until_ready(loss3)
    expected3 = ref(a3, p3, n3)
    assert jnp.allclose(loss3, expected3, atol=1e-5, rtol=1e-5), (loss3, expected3)

    print("KERNEL_OK")
</pallas_src>

<mosaic_0001>
module attributes {stable_mosaic.version = 11 : i64} {
  func.func @_triplet_loss_kernel(%arg0: i32, %arg1: memref<8x128xf32, #tpu.memory_space<vmem>>, %arg2: memref<8x128xf32, #tpu.memory_space<vmem>>, %arg3: memref<8x128xf32, #tpu.memory_space<vmem>>, %arg4: memref<1xf32, #tpu.memory_space<smem>>, %arg5: memref<8x1xf32, #tpu.memory_space<vmem>>) attributes {dimension_semantics = [#tpu.dimension_semantics<arbitrary>], iteration_bounds = array<i64: 1>, scalar_prefetch = 0 : i64, scratch_operands = 1 : i64, tpu.core_type = #tpu.core_type<tc>, window_params = [{transform_indices = @transform_0, window_bounds = array<i64: 8, 128>}, {transform_indices = @transform_1, window_bounds = array<i64: 8, 128>}, {transform_indices = @transform_2, window_bounds = array<i64: 8, 128>}, {transform_indices = @transform_3, window_bounds = array<i64: 1>}]} {
    %c0_i32 = arith.constant 0 : i32
    %0 = arith.cmpi eq, %arg0, %c0_i32 : i32
    %1 = arith.extui %0 : i1 to i32
    %c0_i32_0 = arith.constant 0 : i32
    %2 = arith.cmpi ne, %1, %c0_i32_0 : i32
    scf.if %2 {
      %cst_20 = arith.constant 0.000000e+00 : f32
      %42 = vector.broadcast %cst_20 : f32 to vector<8x1xf32>
      %c0_21 = arith.constant 0 : index
      %c0_22 = arith.constant 0 : index
      %43 = vector.load %arg5[%c0_21, %c0_22] : memref<8x1xf32, #tpu.memory_space<vmem>>, vector<8x1xf32>
      tpu.vector_store %arg5[%c0_21, %c0_22], %42 {strides = array<i32>} : memref<8x1xf32, #tpu.memory_space<vmem>>, vector<8x1xf32>,
    } else {
    }
    %c0 = arith.constant 0 : index
    %c0_1 = arith.constant 0 : index
    %3 = vector.load %arg1[%c0, %c0_1] : memref<8x128xf32, #tpu.memory_space<vmem>>, vector<8x128xf32>
    %c0_2 = arith.constant 0 : index
    %c0_3 = arith.constant 0 : index
    %4 = vector.load %arg2[%c0_2, %c0_3] : memref<8x128xf32, #tpu.memory_space<vmem>>, vector<8x128xf32>
    %c0_4 = arith.constant 0 : index
    %c0_5 = arith.constant 0 : index
    %5 = vector.load %arg3[%c0_4, %c0_5] : memref<8x128xf32, #tpu.memory_space<vmem>>, vector<8x128xf32>
    %6 = arith.mulf %3, %3 : vector<8x128xf32>
    %cst = arith.constant dense<0.000000e+00> : vector<8xf32>
    %7 = vector.multi_reduction <add>, %6, %cst [1] : vector<8x128xf32> to vector<8xf32>
    %8 = vector.shape_cast %7 : vector<8xf32> to vector<8x1xf32>
    %9 = arith.mulf %4, %4 : vector<8x128xf32>
    %cst_6 = arith.constant dense<0.000000e+00> : vector<8xf32>
    %10 = vector.multi_reduction <add>, %9, %cst_6 [1] : vector<8x128xf32> to vector<8xf32>
    %11 = vector.shape_cast %10 : vector<8xf32> to vector<8x1xf32>
    %12 = arith.mulf %5, %5 : vector<8x128xf32>
    %cst_7 = arith.constant dense<0.000000e+00> : vector<8xf32>
    %13 = vector.multi_reduction <add>, %12, %cst_7 [1] : vector<8x128xf32> to vector<8xf32>
    %14 = vector.shape_cast %13 : vector<8xf32> to vector<8x1xf32>
    %15 = arith.mulf %3, %4 : vector<8x128xf32>
    %cst_8 = arith.constant dense<0.000000e+00> : vector<8xf32>
    %16 = vector.multi_reduction <add>, %15, %cst_8 [1] : vector<8x128xf32> to vector<8xf32>
    %17 = vector.shape_cast %16 : vector<8xf32> to vector<8x1xf32>
    %18 = arith.mulf %3, %5 : vector<8x128xf32>
    %cst_9 = arith.constant dense<0.000000e+00> : vector<8xf32>
    %19 = vector.multi_reduction <add>, %18, %cst_9 [1] : vector<8x128xf32> to vector<8xf32>
    %20 = vector.shape_cast %19 : vector<8xf32> to vector<8x1xf32>
    %21 = arith.mulf %8, %11 : vector<8x1xf32>
    %cst_10 = arith.constant 1.000000e-16 : f32
    %22 = vector.broadcast %cst_10 : f32 to vector<8x1xf32>
    %23 = arith.maximumf %21, %22 : vector<8x1xf32>
    %24 = math.rsqrt %23 : vector<8x1xf32>
    %25 = arith.mulf %17, %24 : vector<8x1xf32>
    %26 = arith.mulf %8, %14 : vector<8x1xf32>
    %cst_11 = arith.constant 1.000000e-16 : f32
    %27 = vector.broadcast %cst_11 : f32 to vector<8x1xf32>
    %28 = arith.maximumf %26, %27 : vector<8x1xf32>
    %29 = math.rsqrt %28 : vector<8x1xf32>
    %30 = arith.mulf %20, %29 : vector<8x1xf32>
    %cst_12 = arith.constant 5.000000e-01 : f32
    %31 = vector.broadcast %cst_12 : f32 to vector<8x1xf32>
    %32 = arith.subf %31, %25 : vector<8x1xf32>
    %33 = arith.addf %32, %30 : vector<8x1xf32>
    %cst_13 = arith.constant 0.000000e+00 : f32
    %34 = vector.broadcast %cst_13 : f32 to vector<8x1xf32>
    %35 = arith.maximumf %33, %34 : vector<8x1xf32>
    %c0_14 = arith.constant 0 : index
    %c0_15 = arith.constant 0 : index
    %36 = vector.load %arg5[%c0_14, %c0_15] : memref<8x1xf32, #tpu.memory_space<vmem>>, vector<8x1xf32>
    %37 = arith.addf %36, %35 : vector<8x1xf32>
    %c0_16 = arith.constant 0 : index
    %c0_17 = arith.constant 0 : index
    %38 = vector.load %arg5[%c0_16, %c0_17] : memref<8x1xf32, #tpu.memory_space<vmem>>, vector<8x1xf32>
    tpu.vector_store %arg5[%c0_16, %c0_17], %37 {strides = array<i32>} : memref<8x1xf32, #tpu.memory_space<vmem>>, vector<8x1xf32>,
    %c0_i32_18 = arith.constant 0 : i32
    %39 = arith.cmpi eq, %arg0, %c0_i32_18 : i32
    %40 = arith.extui %39 : i1 to i32
    %c0_i32_19 = arith.constant 0 : i32
    %41 = arith.cmpi ne, %40, %c0_i32_19 : i32
    scf.if %41 {
      %c0_20 = arith.constant 0 : index
      %c0_21 = arith.constant 0 : index
      %42 = vector.load %arg5[%c0_20, %c0_21] : memref<8x1xf32, #tpu.memory_space<vmem>>, vector<8x1xf32>
      %43 = vector.shape_cast %42 : vector<8x1xf32> to vector<1x8x1xf32>
      %cst_22 = arith.constant dense<0.000000e+00> : vector<1xf32>
      %44 = vector.multi_reduction <add>, %43, %cst_22 [1, 2] : vector<1x8x1xf32> to vector<1xf32>
      %45 = vector.shape_cast %44 : vector<1xf32> to vector<1x1x1xf32>
      %46 = vector.extract %45[0, 0, 0] : f32 from vector<1x1x1xf32>
      %cst_23 = arith.constant 1.250000e-01 : f32
      %47 = arith.mulf %46, %cst_23 : f32
      %c0_24 = arith.constant 0 : index
      %48 = memref.load %arg4[%c0_24] : memref<1xf32, #tpu.memory_space<smem>>
      memref.store %47, %arg4[%c0_24] : memref<1xf32, #tpu.memory_space<smem>>
    } else {
    }
    return
  }
  func.func @transform_0(%arg0: i32) -> (i32, i32) {
    %c0_i32 = arith.constant 0 : i32
    %c0_i32_0 = arith.constant 0 : i32
    return %arg0, %c0_i32 : i32, i32
  }
  func.func @transform_1(%arg0: i32) -> (i32, i32) {
    %c0_i32 = arith.constant 0 : i32
    %c0_i32_0 = arith.constant 0 : i32
    return %arg0, %c0_i32 : i32, i32
  }
  func.func @transform_2(%arg0: i32) -> (i32, i32) {
    %c0_i32 = arith.constant 0 : i32
    %c0_i32_0 = arith.constant 0 : i32
    return %arg0, %c0_i32 : i32, i32
  }
  func.func @transform_3(%arg0: i32) -> i32 {
    %c0_i32 = arith.constant 0 : i32
    %c0_i32_0 = arith.constant 0 : i32
    return %c0_i32 : i32
  }
}

</mosaic_0001>

<bundles_post_ra>
// kernel: tpu_custom_call.1
= control target key start
LH: loop header
LB: loop body
LE: loop exit
PB: predicated region body
PF: predicated region fallthrough
CT: control target
= control target key end

     0   :  { %8 = vsyncpa [#allocation4], 0  ;;  %s290_s0 = inlined_call_operand.hbm [shape: f32[8,128], index: 0, kind: input, shape index: {}]   ;;  %s291_s1 = inlined_call_operand.hbm [shape: f32[8,128], index: 1, kind: input, shape index: {}]   ;;  %s292_s2 = inlined_call_operand.hbm [shape: f32[8,128], index: 2, kind: input, shape index: {}]   ;;  %s293_s3 = inlined_call_operand.hbm [shape: f32[1], index: 3, kind: output, shape index: {}]  }
   0x1   :  { %9 = vsyncpa [#allocation7], 0 }
   0x2   :  { %10 = vsyncpa [#allocation5], 0  ;;  %s214_s12 = smov [#allocation6]   ;;  %s215_s14 = smov [#allocation3]  }
   0x3   :  { %s27_s13 = sshll.u32 %s214_s12, 4  ;;  %s17_s15 = sshll.u32 %s215_s14, 4  ;;  %s28_s13 = int_to_ptr.vmem [resolvable:$true] %s27_s13  ;;  %s18_s15 = int_to_ptr.vmem [resolvable:$true] %s17_s15 }
   0x4   :  { %s132_s18 = scalar_lea.hbm %s291_s1, 128 }
   0x5   :  { %p133_p0 = scmp.ne.s32.totalorder %s291_s1, %s132_s18  ;;  %p136_p1 = scmp.lt.u32.totalorder %s132_s18, %s291_s1 }
   0x7   :  { %p138_p2 = pnand %p136_p1, %p133_p0 }
   0x9   :  { %141 = shalt.err (!%p138_p2)
}
   0xa   :  { %s142_s23 = scalar_lea.vmem %s28_s13, 128  ;;  %p147_p4 = scmp.lt.s32.totalorder %s28_s13, %s28_s13 }
   0xb   :  { %p143_p3 = scmp.ne.s32.totalorder %s28_s13, %s142_s23  ;;  %p148_p5 = scmp.lt.s32.totalorder %s142_s23, %s142_s23 }
   0xd   :  { %p149_p6 = por %p148_p5, %p147_p4 }
   0xf   :  { %p150_p7 = pnand %p149_p6, %p143_p3 }
  0x11   :  { %153 = shalt.err (!%p150_p7)
}
  0x12   :  { %30 = dma.hbm_to_vmem [thread:$0]  %s291_s1, 128, %s28_s13, [#allocation7]  }
  0x13   :  { %s154_s28 = scalar_lea.hbm %s290_s0, 128 }
  0x14   :  { %p155_p8 = scmp.ne.s32.totalorder %s290_s0, %s154_s28  ;;  %p158_p9 = scmp.lt.u32.totalorder %s154_s28, %s290_s0 }
  0x16   :  { %p160_p10 = pnand %p158_p9, %p155_p8 }
  0x18   :  { %163 = shalt.err (!%p160_p10)
}
  0x19   :  { %s164_s6 = scalar_lea.vmem %s18_s15, 128  ;;  %p169_p12 = scmp.lt.s32.totalorder %s18_s15, %s18_s15 }
  0x1a   :  { %p165_p11 = scmp.ne.s32.totalorder %s18_s15, %s164_s6  ;;  %p170_p13 = scmp.lt.s32.totalorder %s164_s6, %s164_s6 }
  0x1c   :  { %p171_p0 = por %p170_p13, %p169_p12 }
  0x1e   :  { %p172_p1 = pnand %p171_p0, %p165_p11 }
  0x20   :  { %175 = shalt.err (!%p172_p1)
}
  0x21   :  { %20 = dma.hbm_to_vmem [thread:$0]  %s290_s0, 128, %s18_s15, [#allocation4]  }
  0x22   :  { %s216_s8 = smov [#allocation8]   ;;  %s176_s12 = scalar_lea.hbm %s292_s2, 128 }
  0x23   :  { %s37_s9 = sshll.u32 %s216_s8, 4  ;;  %p177_p2 = scmp.ne.s32.totalorder %s292_s2, %s176_s12  ;;  %s38_s9 = int_to_ptr.vmem [resolvable:$true] %s37_s9 }
  0x24   :  { %p180_p3 = scmp.lt.u32.totalorder %s176_s12, %s292_s2 }
  0x26   :  { %p182_p4 = pnand %p180_p3, %p177_p2 }
  0x28   :  { %185 = shalt.err (!%p182_p4)
}
  0x29   :  { %s186_s18 = scalar_lea.vmem %s38_s9, 128  ;;  %p191_p6 = scmp.lt.s32.totalorder %s38_s9, %s38_s9 }
  0x2a   :  { %p187_p5 = scmp.ne.s32.totalorder %s38_s9, %s186_s18  ;;  %p192_p7 = scmp.lt.s32.totalorder %s186_s18, %s186_s18 }
  0x2c   :  { %p193_p8 = por %p192_p7, %p191_p6 }
  0x2e   :  { %p194_p9 = pnand %p193_p8, %p187_p5 }
  0x30   :  { %197 = shalt.err (!%p194_p9)
}
  0x31   :  { %40 = dma.hbm_to_vmem [thread:$0]  %s292_s2, 128, %s38_s9, [#allocation7]  }
  0x32   :  { %208 = dma.done.wait [#allocation4], 128  }
  0x33   :  { %209 = vsyncadd [#allocation4], 4294967168 }
  0x34   :  { %210 = dma.done.wait [#allocation7], 256  }
  0x35   :  { %211 = vsyncadd [#allocation7], 4294967040  ;;  %v58_v0 = vld [vmem:[#allocation8] sm:$0xff]  ;;  %v56_v1 = vld [vmem:[#allocation3] sm:$0xff]  ;;  %vm54_vm0 = vcmask 7168   ;;  %v217_v8 = vmov 0.0  }
  0x36   :  { %v57_v2 = vld [vmem:[#allocation6] sm:$0xff]  ;;  %v65_v3 = vmul.f32 %v58_v0, %v58_v0  ;;  %v59_v4 = vmul.f32 %v56_v1, %v56_v1  ;;  %v71_v7 = vmul.f32 %v58_v0, %v56_v1  ;;  %55 = vst.msk [vmem:[#allocation2] sm:$0xff] %vm54_vm0, %v217_v8  ;;  %s198_s22 = scalar_lea.hbm %s293_s3, 16 }
  0x37   :  { %v62_v5 = vmul.f32 %v57_v2, %v57_v2  ;;  %v68_v6 = vmul.f32 %v57_v2, %v56_v1  ;;  %p199_p10 = scmp.ne.s32.totalorder %s293_s3, %s198_s22  ;;  %p202_p11 = scmp.lt.u32.totalorder %s198_s22, %s293_s3 }
  0x38   :  { %66 = vadd.xlane.f32.xlu1 %v65_v3  ;;  %60 = vadd.xlane.f32.xlu0 %v59_v4 }
  0x39   :  { %p204_p12 = pnand %p202_p11, %p199_p10 }
  0x3c   :  { %63 = vadd.xlane.f32.xlu0 %v62_v5  ;;  %69 = vadd.xlane.f32.xlu1 %v68_v6 }
  0x3d   :  { %v85_v24 = vld [vmem:[#allocation2] sm:$0xff] }
  0x40   :  { %72 = vadd.xlane.f32.xlu0 %v71_v7 }
  0xc5   :  { %v67_v9 = vpop.xlane.xlu1 %66  ;;  %v61_v10 = vpop.xlane.xlu0 %60 }
  0xc6   :  { %v78_v11 = vmul.f32 %v67_v9, %v61_v10 }
  0xc8   :  { %v79_v12 = vmax.f32 %v78_v11, 1e-16 }
  0xc9   :  { %v64_v13 = vpop.xlane.xlu0 %63  ;;  %v70_v16 = vpop.xlane.xlu1 %69 }
  0xca   :  { %v74_v14 = vmul.f32 %v64_v13, %v61_v10  ;;  %128 = vrsqrt.f32 %v79_v12 }
  0xcc   :  { %v75_v15 = vmax.f32 %v74_v14, 1e-16 }
  0xcd   :  { %v73_v19 = vpop.xlane.xlu0 %72 }
  0xce   :  { %130 = vrsqrt.f32 %v75_v15 }
  0xd4   :  { %v129_v17 = vpop.eup %128 }
  0xd5   :  { %v81_v21 = vmul.f32 %v129_v17, %v73_v19 }
  0xd8   :  { %v131_v18 = vpop.eup %130 }
  0xd9   :  { %v77_v20 = vmul.f32 %v131_v18, %v70_v16 }
  0xdb   :  { %v82_v22 = vsub.f32 0.5, %v77_v20 }
  0xdd   :  { %v83_v23 = vadd.f32 %v82_v22, %v81_v21 }
  0xdf   :  { %v84_v25 = vmax.f32 %v83_v23, 0.0 }
  0xe1   :  { %v86_v26 = vadd.f32 %v85_v24, %v84_v25 }
  0xe3   :  { %88 = vst.msk [vmem:[#allocation2] sm:$0xff] %vm54_vm0, %v86_v26 }
  0xea   :  { %v92_v27 = vld [vmem:[#allocation2] sm:$0xff] }
  0xeb   :  { %v93_v28 = vsel %vm54_vm0, %v92_v27, 0.0 }
  0xec   :  { %94 = vadd.xlane.f32.xlu1 %v93_v28 }
 0x179   :  { %v95_v29 = vpop.xlane.xlu1 %94 }
 0x17a   :  { %v96_v30 = vrot.slane %v95_v29, 4 }
 0x17c   :  { %v97_v31 = vadd.f32 %v96_v30, %v95_v29 }
 0x17e   :  { %v98_v32 = vrot.slane %v97_v31, 2 }
 0x180   :  { %v99_v33 = vadd.f32 %v98_v32, %v97_v31 }
 0x182   :  { %v100_v34 = vrot.slane %v99_v33, 1 }
 0x184   :  { %v101_v35 = vadd.f32 %v100_v34, %v99_v33 }
 0x186   :  { %121 = vpush %v101_v35 }
 0x1b7   :  { %s122_s2 = spop %121 }
 0x1b8   :  { %s103_s19 = smul.f32 0.125, %s122_s2 }
 0x1ba   :  { %105 = sst [smem:[#allocation9]] %s103_s19 }
 0x1bb   :  { %207 = shalt.err (!%p204_p12)
}
 0x1bc   :  { %s218_s27 = smov [#allocation9]  }
 0x1bd   :  { %113 = dma.smem_to_hbm %s218_s27, 16, %s293_s3, [#allocation5]  }
 0x1be   :  { %212 = dma.done.wait [#allocation5], 16  }
 0x1bf   :  { %213 = vsyncadd [#allocation5], 4294967280 }
 0x1c0   :  { %117 = sfence }
 0x1c1   :  { %118 = vsyncpa [#allocation4], 1 }
 0x1c2   :  { %119 = vsyncpa [#allocation7], 1 }
 0x1c3   :  { %120 = vsyncpa [#allocation5], 1 }

</bundles_post_ra>
